<compile_context>
chip_gen: v5e
topology: v5e:2x2
jax: 0.10.0
libtpu: 0.0.40
codegen_flags: <defaults>
</compile_context>

<pallas_src>
import jax
import jax.numpy as jnp
from jax.experimental import pallas as pl
from jax.experimental.pallas import tpu as pltpu


def _flatten_copy_kernel(x_ref, o_ref):
    # x_ref / o_ref: (tb, seq_len * dim) VMEM tiles.  Single unmasked,
    # lane-dense whole-tile store — the binding-slot fix from the review.
    o_ref[...] = x_ref[...]


def _choose_row_block(b, n, itemsize, max_block_bytes):
    """Rows per grid step, capped so (in + out) double-buffered blocks stay
    well inside the scoped-VMEM default on all generations (v5e 16 MiB,
    v6e/v7x 32 MiB)."""
    row_bytes = max(n * itemsize, 1)
    tb = max(1, max_block_bytes // row_bytes)
    if tb >= b:
        return b  # whole array in one block (fastest at small sizes)
    # Respect the (8, 128) sublane constraint on the second-to-last block dim.
    tb = (tb // 8) * 8
    if tb < 8 or tb >= b:
        return b
    return tb


def flatten_forward(string, string_len=None, *, max_block_bytes=2 * 1024 * 1024):
    """Equivalent of Flatten.forward: returns (string reshaped to (B, S*D), None)."""
    b, s, d = string.shape
    n = s * d

    # Row-major flatten of trailing contiguous axes: free metadata reshape.
    x2 = jnp.reshape(string, (b, n))

    itemsize = jnp.dtype(string.dtype).itemsize
    tb = _choose_row_block(b, n, itemsize, max_block_bytes)
    grid = (pl.cdiv(b, tb),)

    out = pl.pallas_call(
        _flatten_copy_kernel,
        out_shape=jax.ShapeDtypeStruct((b, n), string.dtype),
        grid_spec=pltpu.PrefetchScalarGridSpec(
            num_scalar_prefetch=0,
            grid=grid,  # many batch rows per step; lane dim = full S*D (multiple of 128 or full extent)
            in_specs=[pl.BlockSpec((tb, n), lambda i: (i, 0))],
            out_specs=pl.BlockSpec((tb, n), lambda i: (i, 0)),
        ),
        compiler_params=pltpu.CompilerParams(
            dimension_semantics=("parallel",),
        ),
    )(x2)

    # PyTorch module returns (flattened, None) — string_len is dropped.
    return out, None


if __name__ == "__main__":
    key = jax.random.PRNGKey(0)
    k1, k2 = jax.random.split(key)

    batch, seq_len, dim = 2, 8, 32
    string = jax.random.normal(k1, (batch, seq_len, dim), dtype=jnp.float32)
    string_len = jax.random.randint(k2, (batch,), 1, seq_len + 1, dtype=jnp.int32)

    out, out_len = flatten_forward(string, string_len)
    out = jax.block_until_ready(out)

    # Reference semantics: string.view(batch, -1), None
    ref = jnp.reshape(string, (batch, -1))
    assert out.shape == (batch, seq_len * dim), out.shape
    assert out.dtype == string.dtype
    assert out_len is None
    assert jnp.array_equal(out, ref), "flatten mismatch"

    print("KERNEL_OK")
</pallas_src>

<mosaic_0001>
module attributes {stable_mosaic.version = 11 : i64} {
  func.func @_flatten_copy_kernel(%arg0: i32, %arg1: memref<2x256xf32, #tpu.memory_space<vmem>>, %arg2: memref<2x256xf32, #tpu.memory_space<vmem>>) attributes {dimension_semantics = [#tpu.dimension_semantics<parallel>], iteration_bounds = array<i64: 1>, scalar_prefetch = 0 : i64, scratch_operands = 0 : i64, tpu.core_type = #tpu.core_type<tc>, window_params = [{transform_indices = @transform_0, window_bounds = array<i64: 2, 256>}, {transform_indices = @transform_1, window_bounds = array<i64: 2, 256>}]} {
    %c0 = arith.constant 0 : index
    %c0_0 = arith.constant 0 : index
    %0 = vector.load %arg1[%c0, %c0_0] : memref<2x256xf32, #tpu.memory_space<vmem>>, vector<2x256xf32>
    %c0_1 = arith.constant 0 : index
    %c0_2 = arith.constant 0 : index
    %1 = vector.load %arg2[%c0_1, %c0_2] : memref<2x256xf32, #tpu.memory_space<vmem>>, vector<2x256xf32>
    tpu.vector_store %arg2[%c0_1, %c0_2], %0 {strides = array<i32>} : memref<2x256xf32, #tpu.memory_space<vmem>>, vector<2x256xf32>,
    return
  }
  func.func @transform_0(%arg0: i32) -> (i32, i32) {
    %c0_i32 = arith.constant 0 : i32
    %c0_i32_0 = arith.constant 0 : i32
    return %arg0, %c0_i32 : i32, i32
  }
  func.func @transform_1(%arg0: i32) -> (i32, i32) {
    %c0_i32 = arith.constant 0 : i32
    %c0_i32_0 = arith.constant 0 : i32
    return %arg0, %c0_i32 : i32, i32
  }
}

</mosaic_0001>

<bundles_post_ra>
// kernel: tpu_custom_call.1
= control target key start
LH: loop header
LB: loop body
LE: loop exit
PB: predicated region body
PF: predicated region fallthrough
CT: control target
= control target key end

     0   :  { %6 = vsyncpa [#allocation3], 0  ;;  %s114_s0 = inlined_call_operand.hbm [shape: f32[2,256], index: 0, kind: input, shape index: {}]   ;;  %s115_s1 = inlined_call_operand.hbm [shape: f32[2,256], index: 1, kind: output, shape index: {}]  }
   0x1   :  { %7 = vsyncpa [#allocation4], 0  ;;  %s13_s8 = sshll.u32 %s114_s0, 4  ;;  %s96_s9 = smov [#allocation2]   ;;  %s14_s8 = int_to_ptr.hbm [resolvable:$true] %s13_s8 }
   0x2   :  { %s15_s10 = sshll.u32 %s96_s9, 4  ;;  %s16_s10 = int_to_ptr.vmem [resolvable:$true] %s15_s10 }
   0x3   :  { %18 = dma.hbm_to_vmem [thread:$0]  %s14_s8, 64, %s16_s10, [#allocation3]  }
   0x4   :  { %92 = dma.done.wait [#allocation3], 64  }
   0x5   :  { %93 = vsyncadd [#allocation3], 4294967232  ;;  %s97_s11 = smov [#allocation5]   ;;  %s32_s15 = sshll.u32 %s115_s1, 4  ;;  %v23_v0 = vld [vmem:[#allocation2] sm:$0xf]  ;;  %s33_s15 = int_to_ptr.hbm [resolvable:$true] %s32_s15 }
   0x6   :  { %s30_s12 = sshll.u32 %s97_s11, 4  ;;  %24 = vst [vmem:[#allocation5] sm:$0xf] %v23_v0  ;;  %s31_s12 = int_to_ptr.vmem [resolvable:$true] %s30_s12 }
   0x7   :  { %35 = dma.vmem_to_hbm [thread:$0]  %s31_s12, 64, %s33_s15, [#allocation4]  }
   0x8   :  { %94 = dma.done.wait [#allocation4], 64  }
   0x9   :  { %95 = vsyncadd [#allocation4], 4294967232 }
   0xa   :  { %40 = vsyncpa [#allocation3], 1 }
   0xb   :  { %41 = vsyncpa [#allocation4], 1 }

</bundles_post_ra>
